<compile_context>
chip_gen: v7x
topology: tpu7x:2x2x1
jax: 0.10.0
libtpu: 0.0.40
codegen_flags: <defaults>
</compile_context>

<pallas_src>
import jax
import jax.numpy as jnp
from jax.experimental import pallas as pl
from jax.experimental.pallas import tpu as pltpu

STATE_DIM = 24   # BipedalWalker-v3 observation dim
HIDDEN = 64


def _round_up(x, m):
    return (x + m - 1) // m * m


def _cdiv(a, b):
    return (a + b - 1) // b


def critic_kernel(x_ref, w1_ref, b1_ref, w2_ref, b2_ref, w3_ref, b3_ref, out_ref):
    # Feature-major compute: batch maps onto the MXU lane (N) axis.
    # x_ref: [TB, STATE_DIM] f32 -> transpose (XLU) -> [STATE_DIM, TB], cast to bf16
    # for the MXU; all accumulation and elementwise math stays f32.
    xt = x_ref[...].T.astype(jnp.bfloat16)                       # [24, TB] bf16

    # Layer 1: [64, 24] @ [24, TB] -> [64, TB] (f32 accumulate).
    h1 = jnp.dot(w1_ref[...].astype(jnp.bfloat16), xt,
                 preferred_element_type=jnp.float32)
    h1 = jnp.maximum(h1 + b1_ref[...], 0.0)                      # bias/ReLU in f32

    # Layer 2: [64, 64] @ [64, TB] -> [64, TB].
    h2 = jnp.dot(w2_ref[...].astype(jnp.bfloat16), h1.astype(jnp.bfloat16),
                 preferred_element_type=jnp.float32)
    h2 = jnp.maximum(h2 + b2_ref[...], 0.0)

    # Value head: [1, 64] @ [64, TB] -> lane-dense [1, TB] output row.
    v = jnp.dot(w3_ref[...].astype(jnp.bfloat16), h2.astype(jnp.bfloat16),
                preferred_element_type=jnp.float32)
    out_ref[...] = (v + b3_ref[...]).astype(out_ref.dtype)


def critic_forward(state, params, tb=4096):
    """state: [B, STATE_DIM] float32 -> value: [B, 1] float32."""
    w1, b1, w2, b2, w3, b3 = params
    B = state.shape[0]

    # Batch tile: multiple of 128 (batch lives on the lane axis of the matmul outputs
    # and of the [1, TB] output block). Lanes below 128 would be MXU-padded anyway,
    # so 128 granularity wastes nothing.
    TB = min(tb, _round_up(B, 128))
    # v7x has 2 TensorCores: aim for >= 2 grid steps when the batch allows it
    # (measured no-op on single-TC v5e/v6e).
    if _cdiv(B, TB) < 2 and B > 128:
        TB = max(128, _round_up(_cdiv(B, 2), 128))

    num_tiles = _cdiv(B, TB)
    Bp = num_tiles * TB  # padded output width; ragged last input block handled by Pallas

    weight_spec = lambda arr: pl.BlockSpec(arr.shape, lambda i: (0, 0))

    flops = 2 * Bp * (STATE_DIM * HIDDEN + HIDDEN * HIDDEN + HIDDEN)
    param_bytes = sum(int(p.size) * 4 for p in params)
    bytes_accessed = B * STATE_DIM * 4 + Bp * 4 + param_bytes

    out = pl.pallas_call(
        critic_kernel,
        out_shape=jax.ShapeDtypeStruct((1, Bp), jnp.float32),
        grid=(num_tiles,),
        in_specs=[
            pl.BlockSpec((TB, STATE_DIM), lambda i: (i, 0)),
            weight_spec(w1), weight_spec(b1),
            weight_spec(w2), weight_spec(b2),
            weight_spec(w3), weight_spec(b3),
        ],
        out_specs=pl.BlockSpec((1, TB), lambda i: (0, i)),
        compiler_params=pltpu.CompilerParams(
            dimension_semantics=("parallel",),
        ),
        cost_estimate=pl.CostEstimate(
            flops=flops,
            transcendentals=0,
            bytes_accessed=bytes_accessed,
        ),
    )(state, w1, b1, w2, b2, w3, b3)

    return out[0, :B].reshape(B, 1)


def init_params(key, state_dim=STATE_DIM, hidden=HIDDEN):
    """Init mimicking PyTorch nn.Linear default (U[-1/sqrt(fan_in), +1/sqrt(fan_in)]).
    Weights are kept in PyTorch-native [out, in] layout (feature-major kernel);
    biases are stored as [out, 1] columns so they broadcast across the lane/batch axis."""
    ks = jax.random.split(key, 6)

    def uniform(k, shape, fan_in):
        bound = 1.0 / jnp.sqrt(float(fan_in))
        return jax.random.uniform(k, shape, jnp.float32, -bound, bound)

    w1 = uniform(ks[0], (hidden, state_dim), state_dim)   # [64, 24]
    b1 = uniform(ks[1], (hidden, 1), state_dim)           # [64, 1]
    w2 = uniform(ks[2], (hidden, hidden), hidden)         # [64, 64]
    b2 = uniform(ks[3], (hidden, 1), hidden)               # [64, 1]
    w3 = uniform(ks[4], (1, hidden), hidden)               # [1, 64]
    b3 = uniform(ks[5], (1, 1), hidden)                    # [1, 1]
    return (w1, b1, w2, b2, w3, b3)


def critic_reference(state, params):
    w1, b1, w2, b2, w3, b3 = params
    h1 = jnp.maximum(state @ w1.T + b1.T, 0.0)
    h2 = jnp.maximum(h1 @ w2.T + b2.T, 0.0)
    return h2 @ w3.T + b3


if __name__ == "__main__":
    key = jax.random.PRNGKey(0)
    pkey, xkey = jax.random.split(key)

    params = init_params(pkey)
    batch = 8
    state = jax.random.normal(xkey, (batch, STATE_DIM), jnp.float32)

    value = critic_forward(state, params)
    value = jax.block_until_ready(value)

    ref = critic_reference(state, params)
    assert value.shape == (batch, 1), value.shape
    # bf16 MXU operands with f32 accumulation: expect ~1e-2-level agreement vs f32 ref.
    assert jnp.allclose(value, ref, atol=5e-2, rtol=5e-2), (value, ref)

    print("KERNEL_OK")
</pallas_src>

<mosaic_0001>
module attributes {stable_mosaic.version = 11 : i64} {
  func.func @critic_kernel(%arg0: i32, %arg1: memref<128x24xf32, #tpu.memory_space<vmem>>, %arg2: memref<64x24xf32, #tpu.memory_space<vmem>>, %arg3: memref<64x1xf32, #tpu.memory_space<vmem>>, %arg4: memref<64x64xf32, #tpu.memory_space<vmem>>, %arg5: memref<64x1xf32, #tpu.memory_space<vmem>>, %arg6: memref<1x64xf32, #tpu.memory_space<vmem>>, %arg7: memref<1x1xf32, #tpu.memory_space<vmem>>, %arg8: memref<1x128xf32, #tpu.memory_space<vmem>>) attributes {dimension_semantics = [#tpu.dimension_semantics<parallel>], iteration_bounds = array<i64: 1>, scalar_prefetch = 0 : i64, scratch_operands = 0 : i64, tpu.core_type = #tpu.core_type<tc>, window_params = [{transform_indices = @transform_0, window_bounds = array<i64: 128, 24>}, {pipeline_mode = #tpu.pipeline_mode<synchronous>, transform_indices = @transform_1, window_bounds = array<i64: 64, 24>}, {pipeline_mode = #tpu.pipeline_mode<synchronous>, transform_indices = @transform_2, window_bounds = array<i64: 64, 1>}, {pipeline_mode = #tpu.pipeline_mode<synchronous>, transform_indices = @transform_3, window_bounds = array<i64: 64, 64>}, {pipeline_mode = #tpu.pipeline_mode<synchronous>, transform_indices = @transform_4, window_bounds = array<i64: 64, 1>}, {pipeline_mode = #tpu.pipeline_mode<synchronous>, transform_indices = @transform_5, window_bounds = array<i64: 1, 64>}, {pipeline_mode = #tpu.pipeline_mode<synchronous>, transform_indices = @transform_6, window_bounds = array<i64: 1, 1>}, {transform_indices = @transform_7, window_bounds = array<i64: 1, 128>}]} {
    %c0 = arith.constant 0 : index
    %c0_0 = arith.constant 0 : index
    %0 = vector.load %arg1[%c0, %c0_0] : memref<128x24xf32, #tpu.memory_space<vmem>>, vector<128x24xf32>
    %1 = tpu.transpose %0, [1, 0] : vector<128x24xf32> -> vector<24x128xf32>
    %2 = arith.truncf %1 : vector<24x128xf32> to vector<24x128xbf16>
    %c0_1 = arith.constant 0 : index
    %c0_2 = arith.constant 0 : index
    %3 = vector.load %arg2[%c0_1, %c0_2] : memref<64x24xf32, #tpu.memory_space<vmem>>, vector<64x24xf32>
    %4 = arith.truncf %3 : vector<64x24xf32> to vector<64x24xbf16>
    %cst = arith.constant dense<0.000000e+00> : vector<64x128xf32>
    %5 = tpu.matmul %4, %2, %cst {dimension_numbers = #tpu.dot_dimension_numbers<[1], [0], [0], [1], [0, 0, 1, 1], [], []>} : vector<64x24xbf16>, vector<24x128xbf16>, vector<64x128xf32> -> vector<64x128xf32>
    %c0_3 = arith.constant 0 : index
    %c0_4 = arith.constant 0 : index
    %6 = vector.load %arg3[%c0_3, %c0_4] : memref<64x1xf32, #tpu.memory_space<vmem>>, vector<64x1xf32>
    %7 = vector.broadcast %6 : vector<64x1xf32> to vector<64x128xf32>
    %8 = arith.addf %5, %7 : vector<64x128xf32>
    %cst_5 = arith.constant 0.000000e+00 : f32
    %9 = vector.broadcast %cst_5 : f32 to vector<64x128xf32>
    %10 = arith.maximumf %8, %9 : vector<64x128xf32>
    %c0_6 = arith.constant 0 : index
    %c0_7 = arith.constant 0 : index
    %11 = vector.load %arg4[%c0_6, %c0_7] : memref<64x64xf32, #tpu.memory_space<vmem>>, vector<64x64xf32>
    %12 = arith.truncf %11 : vector<64x64xf32> to vector<64x64xbf16>
    %13 = arith.truncf %10 : vector<64x128xf32> to vector<64x128xbf16>
    %cst_8 = arith.constant dense<0.000000e+00> : vector<64x128xf32>
    %14 = tpu.matmul %12, %13, %cst_8 {dimension_numbers = #tpu.dot_dimension_numbers<[1], [0], [0], [1], [0, 0, 1, 1], [], []>} : vector<64x64xbf16>, vector<64x128xbf16>, vector<64x128xf32> -> vector<64x128xf32>
    %c0_9 = arith.constant 0 : index
    %c0_10 = arith.constant 0 : index
    %15 = vector.load %arg5[%c0_9, %c0_10] : memref<64x1xf32, #tpu.memory_space<vmem>>, vector<64x1xf32>
    %16 = vector.broadcast %15 : vector<64x1xf32> to vector<64x128xf32>
    %17 = arith.addf %14, %16 : vector<64x128xf32>
    %cst_11 = arith.constant 0.000000e+00 : f32
    %18 = vector.broadcast %cst_11 : f32 to vector<64x128xf32>
    %19 = arith.maximumf %17, %18 : vector<64x128xf32>
    %c0_12 = arith.constant 0 : index
    %c0_13 = arith.constant 0 : index
    %20 = vector.load %arg6[%c0_12, %c0_13] : memref<1x64xf32, #tpu.memory_space<vmem>>, vector<1x64xf32>
    %21 = arith.truncf %20 : vector<1x64xf32> to vector<1x64xbf16>
    %22 = arith.truncf %19 : vector<64x128xf32> to vector<64x128xbf16>
    %cst_14 = arith.constant dense<0.000000e+00> : vector<1x128xf32>
    %23 = tpu.matmul %21, %22, %cst_14 {dimension_numbers = #tpu.dot_dimension_numbers<[1], [0], [0], [1], [0, 0, 1, 1], [], []>} : vector<1x64xbf16>, vector<64x128xbf16>, vector<1x128xf32> -> vector<1x128xf32>
    %c0_15 = arith.constant 0 : index
    %c0_16 = arith.constant 0 : index
    %24 = vector.load %arg7[%c0_15, %c0_16] : memref<1x1xf32, #tpu.memory_space<vmem>>, vector<1x1xf32>
    %25 = vector.broadcast %24 : vector<1x1xf32> to vector<1x128xf32>
    %26 = arith.addf %23, %25 : vector<1x128xf32>
    %c0_17 = arith.constant 0 : index
    %c0_18 = arith.constant 0 : index
    %27 = vector.load %arg8[%c0_17, %c0_18] : memref<1x128xf32, #tpu.memory_space<vmem>>, vector<1x128xf32>
    tpu.vector_store %arg8[%c0_17, %c0_18], %26 {strides = array<i32>} : memref<1x128xf32, #tpu.memory_space<vmem>>, vector<1x128xf32>,
    return
  }
  func.func @transform_0(%arg0: i32) -> (i32, i32) {
    %c0_i32 = arith.constant 0 : i32
    %c0_i32_0 = arith.constant 0 : i32
    return %arg0, %c0_i32 : i32, i32
  }
  func.func @transform_1(%arg0: i32) -> (i32, i32) {
    %c0_i32 = arith.constant 0 : i32
    %c0_i32_0 = arith.constant 0 : i32
    %c0_i32_1 = arith.constant 0 : i32
    return %c0_i32, %c0_i32_0 : i32, i32
  }
  func.func @transform_2(%arg0: i32) -> (i32, i32) {
    %c0_i32 = arith.constant 0 : i32
    %c0_i32_0 = arith.constant 0 : i32
    %c0_i32_1 = arith.constant 0 : i32
    return %c0_i32, %c0_i32_0 : i32, i32
  }
  func.func @transform_3(%arg0: i32) -> (i32, i32) {
    %c0_i32 = arith.constant 0 : i32
    %c0_i32_0 = arith.constant 0 : i32
    %c0_i32_1 = arith.constant 0 : i32
    return %c0_i32, %c0_i32_0 : i32, i32
  }
  func.func @transform_4(%arg0: i32) -> (i32, i32) {
    %c0_i32 = arith.constant 0 : i32
    %c0_i32_0 = arith.constant 0 : i32
    %c0_i32_1 = arith.constant 0 : i32
    return %c0_i32, %c0_i32_0 : i32, i32
  }
  func.func @transform_5(%arg0: i32) -> (i32, i32) {
    %c0_i32 = arith.constant 0 : i32
    %c0_i32_0 = arith.constant 0 : i32
    %c0_i32_1 = arith.constant 0 : i32
    return %c0_i32, %c0_i32_0 : i32, i32
  }
  func.func @transform_6(%arg0: i32) -> (i32, i32) {
    %c0_i32 = arith.constant 0 : i32
    %c0_i32_0 = arith.constant 0 : i32
    %c0_i32_1 = arith.constant 0 : i32
    return %c0_i32, %c0_i32_0 : i32, i32
  }
  func.func @transform_7(%arg0: i32) -> (i32, i32) {
    %c0_i32 = arith.constant 0 : i32
    %c0_i32_0 = arith.constant 0 : i32
    return %c0_i32, %arg0 : i32, i32
  }
}

</mosaic_0001>

<bundles_post_ra>
// kernel: tpu_custom_call.1
= control target key start
LH: loop header
LB: loop body
LE: loop exit
PB: predicated region body
PF: predicated region fallthrough
CT: control target
= control target key end

     0   :  { %s768_s0 = inlined_call_operand.vmem [shape: f32[8,24], index: 0, kind: input, shape index: {}]   ;;  %s769_s1 = inlined_call_operand.vmem [shape: f32[64,24], index: 1, kind: input, shape index: {}]   ;;  %s770_s2 = inlined_call_operand.vmem [shape: f32[64,1], index: 2, kind: input, shape index: {}]   ;;  %s771_s3 = inlined_call_operand.vmem [shape: f32[64,64], index: 3, kind: input, shape index: {}]   ;;  %s772_s4 = inlined_call_operand.vmem [shape: f32[64,1], index: 4, kind: input, shape index: {}]   ;;  %s773_s5 = inlined_call_operand.vmem [shape: f32[1,64], index: 5, kind: input, shape index: {}]   ;;  %s774_s6 = inlined_call_operand.<no memory space> [shape: f32[1,1], index: 6, kind: input, shape index: {}]   ;;  %s775_s7 = inlined_call_operand.hbm [shape: f32[1,128], index: 7, kind: output, shape index: {}]  }
   0x1   :  { %v12_v0 = vstv %s774_s6 }
   0x2   :  { %13 = vst [vmem:[#allocation2] sm:$0x1] %v12_v0 }
   0x3   :  { %v30_v1 = vld [vmem:[%s768_s0] sm:$0xff]  ;;  %v31_v2 = vld [vmem:[%s768_s0 + $0x8] sm:$0xff] }
   0x4   :  { %46 = vxpose.xlu0.b32.start [1/16] (narrow) %v30_v1, 24 }
   0x8   :  { %47 = vxpose.xlu0.b32.cont [2/16] (narrow) %v31_v2, 24 }
   0x9   :  { %14 = vsyncpa [#allocation4], 0  ;;  %v32_v3 = vld [vmem:[%s768_s0 + $0x10] sm:$0xff]  ;;  %v33_v4 = vld [vmem:[%s768_s0 + $0x18] sm:$0xff]  ;;  %vm140_vm0 = vcmask 195584   ;;  %v553_v12 = vmov 0  }
   0xa   :  { %v80_v5 = vld [vmem:[%s769_s1] sm:$0xff]  ;;  %v81_v6 = vld [vmem:[%s769_s1 + $0x8] sm:$0xff]  ;;  %v36_v10 = vld [vmem:[%s768_s0 + $0x30] sm:$0xff]  ;;  %527 = vset.pattern.permute.xlu1 %v553_v12  ;;  %vm153_vm1 = vcmask 1043456   ;;  %vm294_vm2 = vcmask 523264   ;;  %vm555_vm3 = vmmov 0  }
   0xb   :  { %v88_v7 = vpack.c.bf16 %v81_v6, %v80_v5  ;;  %v34_v8 = vld [vmem:[%s768_s0 + $0x20] sm:$0xff]  ;;  %v35_v9 = vld [vmem:[%s768_s0 + $0x28] sm:$0xff]  ;;  %v37_v13 = vld [vmem:[%s768_s0 + $0x38] sm:$0xff]  ;;  %s556_s21 = smov [#allocation3]  }
   0xc   :  { %48 = vxpose.xlu0.b32.cont [3/16] (narrow) %v32_v3, 24  ;;  %v92_v11 = vld [vmem:[%s770_s2] sm:$0xff]  ;;  %v93_v14 = vld [vmem:[%s770_s2 + $0x8] sm:$0xff]  ;;  %v94_v16 = vld [vmem:[%s770_s2 + $0x10] sm:$0xff]  ;;  %s446_s22 = sshll.u32 %s556_s21, 4  ;;  %s447_s22 = int_to_ptr.vmem [resolvable:$true] %s446_s22 }
   0xd   :  { %486 = vmatprep.mubr.msk.bf16.mxu0 %vm140_vm0, %v88_v7  ;;  %102 = vperm.xlu1 %527, %v92_v11   ;;  %v38_v15 = vld [vmem:[%s768_s0 + $0x40] sm:$0xff]  ;;  %v39_v17 = vld [vmem:[%s768_s0 + $0x48] sm:$0xff]  ;;  %v95_v18 = vld [vmem:[%s770_s2 + $0x18] sm:$0xff]  ;;  %s533_s23 = scalar_lea.vmem %s447_s22, 32  ;;  %p534_p1 = scmp.lt.s32.totalorder %s447_s22, %s447_s22 }
   0xe   :  { %v40_v19 = vld [vmem:[%s768_s0 + $0x50] sm:$0xff]  ;;  %v96_v20 = vld [vmem:[%s770_s2 + $0x20] sm:$0xff]  ;;  %v41_v21 = vld [vmem:[%s768_s0 + $0x58] sm:$0xff] }
   0xf   :  { %v97_v22 = vld [vmem:[%s770_s2 + $0x28] sm:$0xff]  ;;  %v42_v23 = vld [vmem:[%s768_s0 + $0x60] sm:$0xff]  ;;  %v98_v24 = vld [vmem:[%s770_s2 + $0x30] sm:$0xff] }
  0x10   :  { %49 = vxpose.xlu0.b32.cont [4/16] (narrow) %v33_v4, 24  ;;  %v43_v25 = vld [vmem:[%s768_s0 + $0x68] sm:$0xff]  ;;  %v99_v26 = vld [vmem:[%s770_s2 + $0x38] sm:$0xff]  ;;  %v44_v27 = vld [vmem:[%s768_s0 + $0x70] sm:$0xff] }
  0x11   :  { %107 = vperm.xlu1 %527, %v93_v14   ;;  %v246_v28 = vld [vmem:[%s772_s4] sm:$0xff]  ;;  %v45_v29 = vld [vmem:[%s768_s0 + $0x78] sm:$0xff]  ;;  %v247_v30 = vld [vmem:[%s772_s4 + $0x8] sm:$0xff] }
  0x12   :  { %v248_v31 = vld [vmem:[%s772_s4 + $0x10] sm:$0xff]  ;;  %v249_v32 = vld [vmem:[%s772_s4 + $0x18] sm:$0xff]  ;;  %v250_v33 = vld [vmem:[%s772_s4 + $0x20] sm:$0xff] }
  0x13   :  { %v251_v34 = vld [vmem:[%s772_s4 + $0x28] sm:$0xff]  ;;  %v252_v35 = vld [vmem:[%s772_s4 + $0x30] sm:$0xff]  ;;  %v253_v36 = vld [vmem:[%s772_s4 + $0x38] sm:$0xff] }
  0x14   :  { %50 = vxpose.xlu0.b32.cont [5/16] (narrow) %v34_v8, 24  ;;  %v82_v41 = vld [vmem:[%s769_s1 + $0x10] sm:$0xff]  ;;  %v83_v42 = vld [vmem:[%s769_s1 + $0x18] sm:$0xff]  ;;  %v84_v44 = vld [vmem:[%s769_s1 + $0x20] sm:$0xff] }
  0x15   :  { %112 = vperm.xlu1 %527, %v94_v16   ;;  %v85_v45 = vld [vmem:[%s769_s1 + $0x28] sm:$0xff]  ;;  %v89_v47 = vpack.c.bf16 %v83_v42, %v82_v41  ;;  %v86_v49 = vld [vmem:[%s769_s1 + $0x30] sm:$0xff]  ;;  %v87_v50 = vld [vmem:[%s769_s1 + $0x38] sm:$0xff] }
  0x16   :  { %v90_v48 = vpack.c.bf16 %v85_v45, %v84_v44  ;;  %v91_v51 = vpack.c.bf16 %v87_v50, %v86_v49  ;;  %v230_v52 = vld [vmem:[%s771_s3] sm:$0xff]  ;;  %v231_v53 = vld [vmem:[%s771_s3 + $0x8] sm:$0xff] }
  0x17   :  { %v238_v54 = vpack.c.bf16 %v231_v53, %v230_v52 }
  0x18   :  { %51 = vxpose.xlu0.b32.cont [6/16] (narrow) %v35_v9, 24 }
  0x19   :  { %117 = vperm.xlu1 %527, %v95_v18   ;;  %502 = vmatprep.mubr.msk.bf16.mxu1 %vm294_vm2, %v238_v54 }
  0x1c   :  { %52 = vxpose.xlu0.b32.cont [7/16] (narrow) %v36_v10, 24 }
  0x1d   :  { %122 = vperm.xlu1 %527, %v96_v20  }
  0x20   :  { %53 = vxpose.xlu0.b32.cont [8/16] (narrow) %v37_v13, 24 }
  0x21   :  { %127 = vperm.xlu1 %527, %v97_v22  }
  0x24   :  { %54 = vxpose.xlu0.b32.cont [9/16] (narrow) %v38_v15, 24 }
  0x25   :  { %132 = vperm.xlu1 %527, %v98_v24  }
  0x28   :  { %55 = vxpose.xlu0.b32.cont [10/16] (narrow) %v39_v17, 24 }
  0x29   :  { %137 = vperm.xlu1 %527, %v99_v26  }
  0x2c   :  { %56 = vxpose.xlu0.b32.cont [11/16] (narrow) %v40_v19, 24 }
  0x2d   :  { %256 = vperm.xlu1 %527, %v246_v28   ;;  %v233_v28 = vld [vmem:[%s771_s3 + $0x18] sm:$0xff] }
  0x30   :  { %57 = vxpose.xlu0.b32.cont [12/16] (narrow) %v41_v21, 24 }
  0x31   :  { %261 = vperm.xlu1 %527, %v247_v30   ;;  %v235_v30 = vld [vmem:[%s771_s3 + $0x28] sm:$0xff] }
  0x34   :  { %58 = vxpose.xlu0.b32.cont [13/16] (narrow) %v42_v23, 24 }
  0x35   :  { %266 = vperm.xlu1 %527, %v248_v31  }
  0x38   :  { %59 = vxpose.xlu0.b32.cont [14/16] (narrow) %v43_v25, 24 }
  0x39   :  { %271 = vperm.xlu1 %527, %v249_v32  }
  0x3c   :  { %60 = vxpose.xlu0.b32.cont [15/16] (narrow) %v44_v27, 24  ;;  %v232_v27 = vld [vmem:[%s771_s3 + $0x10] sm:$0xff] }
  0x3d   :  { %276 = vperm.xlu1 %527, %v250_v33   ;;  %v239_v31 = vpack.c.bf16 %v233_v28, %v232_v27  ;;  %v236_v33 = vld [vmem:[%s771_s3 + $0x30] sm:$0xff] }
  0x40   :  { %61 = vxpose.xlu0.b32.end [16/16] (narrow) %v45_v29, 24  ;;  %v234_v29 = vld [vmem:[%s771_s3 + $0x20] sm:$0xff] }
  0x41   :  { %281 = vperm.xlu1 %527, %v251_v34   ;;  %v240_v32 = vpack.c.bf16 %v235_v30, %v234_v29  ;;  %v237_v34 = vld [vmem:[%s771_s3 + $0x38] sm:$0xff] }
  0x45   :  { %286 = vperm.xlu1 %527, %v252_v35   ;;  %v241_v35 = vpack.c.bf16 %v237_v34, %v236_v33 }
  0x49   :  { %291 = vperm.xlu1 %527, %v253_v36   ;;  %v554_v36 = vmov 0.0  }
  0x69   :  { %528 = vset.pattern.permute.xlu0 %v553_v12 }
  0x84   :  { %v62_v37 = vpop.trf.xlu0 }
  0x88   :  { %v63_v38 = vpop.trf.xlu0 }
  0x89   :  { %v78_v39 = vpack.c.bf16 %v63_v38, %v62_v37  ;;  %v386_v37 = vld [vmem:[#allocation2] sm:$0x1] }
  0x8a   :  { %389 = vperm.xlu0 %528, %v386_v37  }
  0x8b   :  { %482 = vmatprep.subr.bf16.mxu0 %v78_v39 }
  0x8c   :  { %483 = vmatpush3.bf16.msra.mxu0 %v78_v39  ;;  %v64_v40 = vpop.trf.xlu0  ;;  %v103_v55 = vpop.permute.xlu1 %102 }
  0x8d   :  { %v79_v43 = vpack.c.bf16 %v64_v40, %v64_v40 }
  0x8f   :  { %522 = vmatprep.subr.msk.bf16.mxu0 %vm153_vm1, %v79_v43  ;;  %v155_v46 = vsel %vm153_vm1, %v79_v43, 0 }
  0x90   :  { %485 = vmatpush3.bf16.msra.mxu0 %v155_v46  ;;  %v108_v56 = vpop.permute.xlu1 %107 }
  0x91   :  { %510 = vmatprep.subr.bf16.mxu0 %v554_v36 }
  0x93   :  { %487 = vmatmul.mubr.msk.bf16.vlgmr.msra.gmra.mrb[0].mxu0 %vm140_vm0, %v89_v47 }
  0x94   :  { %490 = vmatprep.mubr.msk.bf16.mxu0 %vm140_vm0, %v90_v48  ;;  %v113_v57 = vpop.permute.xlu1 %112 }
  0x98   :  { %v118_v58 = vpop.permute.xlu1 %117 }
  0x9b   :  { %491 = vmatmul.mubr.msk.bf16.gmra.mrb[4].mxu0 %vm140_vm0, %v91_v51 }
  0x9c   :  { %v123_v59 = vpop.permute.xlu1 %122  ;;  %518 = vmatprep.mubr.msk.bf16.mxu0 %vm555_vm3, %v554_v36 }
  0xa0   :  { %v128_v60 = vpop.permute.xlu1 %127 }
  0xa4   :  { %v133_v4 = vpop.permute.xlu1 %132 }
  0xa8   :  { %v138_v15 = vpop.permute.xlu1 %137 }
  0xac   :  { %v257_v38 = vpop.permute.xlu1 %256 }
  0xb0   :  { %v262_v39 = vpop.permute.xlu1 %261 }
  0xb4   :  { %v267_v40 = vpop.permute.xlu1 %266 }
  0xb8   :  { %v272_v41 = vpop.permute.xlu1 %271 }
  0xbc   :  { %v277_v42 = vpop.permute.xlu1 %276 }
  0xc0   :  { %v282_v43 = vpop.permute.xlu1 %281 }
  0xc4   :  { %v287_v51 = vpop.permute.xlu1 %286 }
 0x166   :  { %v488_v61 = vpop.f32.mrb[0].mxu0 }
 0x167   :  { %v200_v62 = vadd.f32 %v488_v61, %v113_v57  ;;  %v191_v63 = vpop.f32.mrb[1].mxu0 }
 0x168   :  { %v192_v0 = vadd.f32 %v191_v63, %v103_v55  ;;  %v489_v1 = vpop.f32.mrb[2].mxu0 }
 0x169   :  { %v203_v2 = vadd.f32 %v489_v1, %v118_v58  ;;  %v194_v3 = vpop.f32.mrb[3].mxu0  ;;  %v224_v6 = vmax.f32 %v200_v62, 0.0  ;;  %v292_v62 = vpop.permute.xlu1 %291 }
 0x16a   :  { %v195_v5 = vadd.f32 %v194_v3, %v108_v56  ;;  %v222_v8 = vmax.f32 %v192_v0, 0.0 }
 0x16b   :  { %v225_v7 = vmax.f32 %v203_v2, 0.0 }
 0x16c   :  { %v223_v9 = vmax.f32 %v195_v5, 0.0 }
 0x16d   :  { %v243_v10 = vpack.c.bf16 %v225_v7, %v224_v6 }
 0x16e   :  { %v492_v11 = vpop.f32.mrb[4].mxu0  ;;  %v242_v12 = vpack.c.bf16 %v223_v9, %v222_v8 }
 0x16f   :  { %v216_v13 = vadd.f32 %v492_v11, %v133_v4  ;;  %v207_v14 = vpop.f32.mrb[5].mxu0 }
 0x170   :  { %v208_v16 = vadd.f32 %v207_v14, %v123_v59  ;;  %v493_v17 = vpop.f32.mrb[6].mxu0  ;;  %494 = vmatprep.subr.bf16.mxu1 %v242_v12 }
 0x171   :  { %v219_v18 = vadd.f32 %v493_v17, %v138_v15  ;;  %v210_v19 = vpop.f32.mrb[7].mxu0  ;;  %495 = vmatpush3.bf16.msra.mxu1 %v242_v12  ;;  %v228_v21 = vmax.f32 %v216_v13, 0.0  ;;  %v392_v12 = vlaneseq  ;;  %v390_v15 = vpop.permute.xlu0 %389 }
 0x172   :  { %v211_v20 = vadd.f32 %v210_v19, %v128_v60  ;;  %496 = vmatprep.subr.bf16.mxu1 %v243_v10  ;;  %v226_v23 = vmax.f32 %v208_v16, 0.0 }
 0x173   :  { %v229_v22 = vmax.f32 %v219_v18, 0.0  ;;  %v393_v13 = vshrl.u32 %v392_v12, 7 }
 0x174   :  { %v227_v24 = vmax.f32 %v211_v20, 0.0 }
 0x175   :  { %v245_v25 = vpack.c.bf16 %v229_v22, %v228_v21  ;;  %497 = vmatpush3.bf16.msra.mxu1 %v243_v10  ;;  %v380_v10 = vld [vmem:[%s773_s5] sm:$0x1]  ;;  %v394_v14 = vsub.s32 0, %v393_v13  ;;  %s529_s5 = scalar_lea.vmem %s447_s22, 16 }
 0x176   :  { %v244_v26 = vpack.c.bf16 %v227_v24, %v226_v23  ;;  %v381_v11 = vpack.c.bf16 %v380_v10, %v380_v10  ;;  %p530_p0 = scmp.ne.s32.totalorder %s447_s22, %s529_s5  ;;  %p535_p2 = scmp.lt.s32.totalorder %s533_s23, %s529_s5 }
 0x177   :  { %v395_v16 = vrot.slane %v390_v15, %v394_v14 }
 0x178   :  { %498 = vmatprep.subr.bf16.mxu1 %v244_v26  ;;  %p536_p3 = por %p535_p2, %p534_p1 }
 0x179   :  { %499 = vmatpush3.bf16.msra.mxu1 %v244_v26 }
 0x17a   :  { %500 = vmatprep.subr.bf16.mxu1 %v245_v25  ;;  %p537_p4 = pnand %p536_p3, %p530_p0 }
 0x17d   :  { %501 = vmatpush3.bf16.msra.mxu1 %v245_v25 }
 0x180   :  { %503 = vmatmul.mubr.msk.bf16.vlgmr.msra.gmra.mrb[0].mxu1 %vm294_vm2, %v239_v31 }
 0x181   :  { %506 = vmatprep.mubr.msk.bf16.mxu1 %vm294_vm2, %v240_v32 }
 0x188   :  { %507 = vmatmul.mubr.msk.bf16.gmra.mrb[4].mxu1 %vm294_vm2, %v241_v35 }
 0x253   :  { %v504_v44 = vpop.f32.mrb[0].mxu1 }
 0x254   :  { %v350_v45 = vadd.f32 %v504_v44, %v267_v40  ;;  %v341_v46 = vpop.f32.mrb[1].mxu1 }
 0x255   :  { %v342_v47 = vadd.f32 %v341_v46, %v257_v38  ;;  %v505_v48 = vpop.f32.mrb[2].mxu1 }
 0x256   :  { %v353_v49 = vadd.f32 %v505_v48, %v272_v41  ;;  %v344_v50 = vpop.f32.mrb[3].mxu1  ;;  %v374_v53 = vmax.f32 %v350_v45, 0.0 }
 0x257   :  { %v345_v52 = vadd.f32 %v344_v50, %v262_v39  ;;  %v372_v55 = vmax.f32 %v342_v47, 0.0 }
 0x258   :  { %v375_v54 = vmax.f32 %v353_v49, 0.0 }
 0x259   :  { %v373_v56 = vmax.f32 %v345_v52, 0.0 }
 0x25a   :  { %v383_v57 = vpack.c.bf16 %v375_v54, %v374_v53 }
 0x25b   :  { %v382_v58 = vpack.c.bf16 %v373_v56, %v372_v55  ;;  %v508_v59 = vpop.f32.mrb[4].mxu1 }
 0x25c   :  { %v366_v60 = vadd.f32 %v508_v59, %v287_v51  ;;  %v357_v61 = vpop.f32.mrb[5].mxu1 }
 0x25d   :  { %v358_v63 = vadd.f32 %v357_v61, %v277_v42  ;;  %v509_v0 = vpop.f32.mrb[6].mxu1  ;;  %511 = vmatpush3.bf16.msra.mxu0 %v382_v58 }
 0x25e   :  { %v369_v1 = vadd.f32 %v509_v0, %v292_v62  ;;  %v360_v2 = vpop.f32.mrb[7].mxu1  ;;  %512 = vmatprep.subr.bf16.mxu0 %v554_v36  ;;  %v378_v4 = vmax.f32 %v366_v60, 0.0 }
 0x25f   :  { %v361_v3 = vadd.f32 %v360_v2, %v282_v43  ;;  %v376_v6 = vmax.f32 %v358_v63, 0.0 }
 0x260   :  { %v379_v5 = vmax.f32 %v369_v1, 0.0 }
 0x261   :  { %v377_v7 = vmax.f32 %v361_v3, 0.0  ;;  %513 = vmatpush3.bf16.msra.mxu0 %v383_v57 }
 0x262   :  { %v385_v8 = vpack.c.bf16 %v379_v5, %v378_v4  ;;  %514 = vmatprep.subr.bf16.mxu0 %v554_v36 }
 0x263   :  { %v384_v9 = vpack.c.bf16 %v377_v7, %v376_v6 }
 0x265   :  { %515 = vmatpush3.bf16.msra.mxu0 %v384_v9 }
 0x266   :  { %516 = vmatprep.subr.bf16.mxu0 %v554_v36 }
 0x269   :  { %517 = vmatpush3.bf16.msra.mxu0 %v385_v8 }
 0x26c   :  { %519 = vmatmul.mubr.msk.bf16.vlgmr.msra.gmra.mrb[8].mxu0 %vm294_vm2, %v381_v11 }
 0x33f   :  { %v433_v17 = vpop.f32.mrb[8].mxu0 }
 0x340   :  { %v434_v18 = vadd.f32 %v433_v17, %v395_v16  ;;  %v520_v19 = vpop.f32.mrb[9].mxu0 }
 0x341   :  { %v436_v20 = vpop.f32.mrb[10].mxu0 }
 0x342   :  { %439 = vst [vmem:[#allocation3] sm:$0x1] %v434_v18  ;;  %v521_v21 = vpop.f32.mrb[11].mxu0 }
 0x343   :  { %540 = shalt.err (!%p537_p4)
}
 0x344   :  { %s541_s25 = scalar_lea.hbm %s775_s7, 16 }
 0x345   :  { %p542_p5 = scmp.ne.s32.totalorder %s775_s7, %s541_s25  ;;  %p545_p6 = scmp.lt.u32.totalorder %s541_s25, %s775_s7 }
 0x347   :  { %p547_p7 = pnand %p545_p6, %p542_p5 }
 0x349   :  { %550 = shalt.err (!%p547_p7)
}
 0x34a   :  { %449 = dma.vmem_to_hbm [thread:$0]  %s447_s22, 16, %s775_s7, [#allocation4]  }
 0x34b   :  { %551 = dma.done.wait [#allocation4], 16  }
 0x34c   :  { %552 = vsyncadd [#allocation4], 4294967280 }
 0x34d   :  { %453 = vsyncpa [#allocation4], 1 }

</bundles_post_ra>
